<compile_context>
chip_gen: v5e
topology: v5e:2x2
jax: 0.10.0
libtpu: 0.0.40
codegen_flags: <defaults>
</compile_context>

<pallas_src>
import jax
import jax.numpy as jnp
from jax.experimental import pallas as pl
from jax.experimental.pallas import tpu as pltpu


def _adapter_kernel(x_ref, w_ref, b_ref, o_ref):
    # x_ref: (Cin, T), w_ref: (Cin, Cout, 1), b_ref: (Cout, 1), o_ref: (Cout, T)
    cin, t = x_ref.shape
    cout = o_ref.shape[0]

    x = x_ref[...].astype(jnp.float32)                       # (Cin, T)
    y = jnp.broadcast_to(b_ref[...].astype(jnp.float32), (cout, t))
    # Cin == 3 -> three broadcast FMAs on the VPU (no MXU K-padding needed).
    for c in range(cin):
        y = y + w_ref[c].astype(jnp.float32) * x[c:c + 1, :]  # (Cout,1)*(1,T)

    # LeakyReLU(negative_slope=0.2)
    o_ref[...] = jnp.where(y > 0, y, 0.2 * y).astype(o_ref.dtype)


def _pick_tile_hw(hw, cap=2048):
    """Largest multiple of 128 that divides hw (<= cap); otherwise the full
    spatial extent (a full-dim block is always a legal TPU block shape)."""
    if hw <= cap:
        return hw
    best = 0
    t = 128
    while t <= cap:
        if hw % t == 0:
            best = t
        t += 128
    return best if best > 0 else hw


def adapter_block(x_nchw, weight, bias, *, tile_hw=None):
    """x_nchw: (N, 3, H, W); weight: (Cout, 3) (Conv2d 1x1 weight squeezed);
    bias: (Cout,). Returns (N, Cout, H, W)."""
    n, cin, h, w = x_nchw.shape
    cout = weight.shape[0]
    assert cin == weight.shape[1]

    hw = h * w
    if tile_hw is None:
        tile_hw = _pick_tile_hw(hw)
    assert hw % tile_hw == 0, "tile_hw must divide H*W"
    assert tile_hw == hw or tile_hw % 128 == 0, "tile_hw must be 128-aligned"

    # Metadata-only reshapes; no transpose / pad / extra HBM traffic for the
    # activations.  Only the tiny (Cout, 3) weight is rearranged.
    x3 = x_nchw.reshape(n, cin, hw)                        # (N, Cin, HW)
    w_rs = jnp.transpose(weight, (1, 0)).reshape(cin, cout, 1)  # (Cin, Cout, 1)
    b_col = bias.reshape(cout, 1)                          # (Cout, 1)

    grid = (n, hw // tile_hw)

    itemsize = jnp.dtype(x_nchw.dtype).itemsize
    cost = pl.CostEstimate(
        flops=2 * n * hw * cin * cout,
        transcendentals=0,
        bytes_accessed=int(itemsize * (n * hw * (cin + cout) + cin * cout + cout)),
    )

    out3 = pl.pallas_call(
        _adapter_kernel,
        out_shape=jax.ShapeDtypeStruct((n, cout, hw), x_nchw.dtype),
        grid_spec=pltpu.PrefetchScalarGridSpec(
            num_scalar_prefetch=0,
            grid=grid,
            in_specs=[
                # Activations: channels on sublanes, pixels on lanes.
                pl.BlockSpec((None, cin, tile_hw), lambda i, j: (i, 0, j)),
                # Tiny resident weight / bias blocks (constant index_map).
                pl.BlockSpec((cin, cout, 1), lambda i, j: (0, 0, 0)),
                pl.BlockSpec((cout, 1), lambda i, j: (0, 0)),
            ],
            # Lane-dense output tile: last dim is a multiple of 128 (or full HW).
            out_specs=pl.BlockSpec((None, cout, tile_hw), lambda i, j: (i, 0, j)),
        ),
        compiler_params=pltpu.CompilerParams(
            dimension_semantics=("parallel", "parallel")),
        cost_estimate=cost,
    )(x3, w_rs, b_col)

    return out3.reshape(n, cout, h, w)


def init_params(key, output_channels):
    """Deterministic init mimicking nn.Conv2d(3, C, 1) default init shapes."""
    kw, kb = jax.random.split(key)
    fan_in = 3  # 3 input channels * 1 * 1 kernel
    bound = 1.0 / (fan_in ** 0.5)
    weight = jax.random.uniform(
        kw, (output_channels, 3), jnp.float32, minval=-bound, maxval=bound)
    bias = jax.random.uniform(
        kb, (output_channels,), jnp.float32, minval=-bound, maxval=bound)
    return weight, bias


if __name__ == "__main__":
    key = jax.random.PRNGKey(0)
    k_x, k_p = jax.random.split(key)

    n, h, w = 2, 16, 16
    output_channels = 4

    x = jax.random.normal(k_x, (n, 3, h, w), jnp.float32)
    weight, bias = init_params(k_p, output_channels)

    out = adapter_block(x, weight, bias)
    out = jax.block_until_ready(out)

    # Reference: 1x1 conv == channel einsum, then LeakyReLU(0.2).
    ref = jnp.einsum("nchw,oc->nohw", x, weight) + bias[None, :, None, None]
    ref = jnp.where(ref > 0, ref, 0.2 * ref)
    assert out.shape == (n, output_channels, h, w)
    assert jnp.allclose(out, ref, atol=1e-5), "mismatch vs reference"

    print("KERNEL_OK")
</pallas_src>

<mosaic_0001>
module attributes {stable_mosaic.version = 11 : i64} {
  func.func @_adapter_kernel(%arg0: i32, %arg1: i32, %arg2: memref<1x3x256xf32, #tpu.memory_space<vmem>>, %arg3: memref<3x4x1xf32, #tpu.memory_space<vmem>>, %arg4: memref<4x1xf32, #tpu.memory_space<vmem>>, %arg5: memref<1x4x256xf32, #tpu.memory_space<vmem>>) attributes {dimension_semantics = [#tpu.dimension_semantics<parallel>, #tpu.dimension_semantics<parallel>], iteration_bounds = array<i64: 2, 1>, scalar_prefetch = 0 : i64, scratch_operands = 0 : i64, tpu.core_type = #tpu.core_type<tc>, window_params = [{transform_indices = @transform_0, window_bounds = array<i64: 1, 3, 256>}, {pipeline_mode = #tpu.pipeline_mode<synchronous>, transform_indices = @transform_1, window_bounds = array<i64: 3, 4, 1>}, {pipeline_mode = #tpu.pipeline_mode<synchronous>, transform_indices = @transform_2, window_bounds = array<i64: 4, 1>}, {transform_indices = @transform_3, window_bounds = array<i64: 1, 4, 256>}]} {
    %c0 = arith.constant 0 : index
    %c0_0 = arith.constant 0 : index
    %c0_1 = arith.constant 0 : index
    %0 = vector.load %arg2[%c0, %c0_0, %c0_1] : memref<1x3x256xf32, #tpu.memory_space<vmem>>, vector<1x3x256xf32>
    %1 = vector.shape_cast %0 : vector<1x3x256xf32> to vector<3x256xf32>
    %c0_2 = arith.constant 0 : index
    %c0_3 = arith.constant 0 : index
    %2 = vector.load %arg4[%c0_2, %c0_3] : memref<4x1xf32, #tpu.memory_space<vmem>>, vector<4x1xf32>
    %3 = vector.shape_cast %2 : vector<4x1xf32> to vector<4x1xf32>
    %4 = vector.broadcast %3 : vector<4x1xf32> to vector<4x256xf32>
    %c0_4 = arith.constant 0 : index
    %c0_5 = arith.constant 0 : index
    %c0_6 = arith.constant 0 : index
    %5 = vector.load %arg3[%c0_4, %c0_5, %c0_6] : memref<3x4x1xf32, #tpu.memory_space<vmem>>, vector<1x4x1xf32>
    %6 = vector.shape_cast %5 : vector<1x4x1xf32> to vector<4x1xf32>
    %7 = vector.extract_strided_slice %1 {offsets = [0, 0], sizes = [1, 256], strides = [1, 1]} : vector<3x256xf32> to vector<1x256xf32>
    %8 = vector.broadcast %6 : vector<4x1xf32> to vector<4x256xf32>
    %9 = vector.broadcast %7 : vector<1x256xf32> to vector<4x256xf32>
    %10 = arith.mulf %8, %9 : vector<4x256xf32>
    %11 = arith.addf %4, %10 : vector<4x256xf32>
    %c1 = arith.constant 1 : index
    %c0_7 = arith.constant 0 : index
    %c0_8 = arith.constant 0 : index
    %12 = vector.load %arg3[%c1, %c0_7, %c0_8] : memref<3x4x1xf32, #tpu.memory_space<vmem>>, vector<1x4x1xf32>
    %13 = vector.shape_cast %12 : vector<1x4x1xf32> to vector<4x1xf32>
    %14 = vector.extract_strided_slice %1 {offsets = [1, 0], sizes = [1, 256], strides = [1, 1]} : vector<3x256xf32> to vector<1x256xf32>
    %15 = vector.broadcast %13 : vector<4x1xf32> to vector<4x256xf32>
    %16 = vector.broadcast %14 : vector<1x256xf32> to vector<4x256xf32>
    %17 = arith.mulf %15, %16 : vector<4x256xf32>
    %18 = arith.addf %11, %17 : vector<4x256xf32>
    %c2 = arith.constant 2 : index
    %c0_9 = arith.constant 0 : index
    %c0_10 = arith.constant 0 : index
    %19 = vector.load %arg3[%c2, %c0_9, %c0_10] : memref<3x4x1xf32, #tpu.memory_space<vmem>>, vector<1x4x1xf32>
    %20 = vector.shape_cast %19 : vector<1x4x1xf32> to vector<4x1xf32>
    %21 = vector.extract_strided_slice %1 {offsets = [2, 0], sizes = [1, 256], strides = [1, 1]} : vector<3x256xf32> to vector<1x256xf32>
    %22 = vector.broadcast %20 : vector<4x1xf32> to vector<4x256xf32>
    %23 = vector.broadcast %21 : vector<1x256xf32> to vector<4x256xf32>
    %24 = arith.mulf %22, %23 : vector<4x256xf32>
    %25 = arith.addf %18, %24 : vector<4x256xf32>
    %cst = arith.constant 0.000000e+00 : f32
    %26 = vector.broadcast %cst : f32 to vector<4x256xf32>
    %27 = arith.cmpf ogt, %25, %26 : vector<4x256xf32>
    %cst_11 = arith.constant 2.000000e-01 : f32
    %28 = vector.broadcast %cst_11 : f32 to vector<4x256xf32>
    %29 = arith.mulf %28, %25 : vector<4x256xf32>
    %30 = arith.select %27, %25, %29 : vector<4x256xi1>, vector<4x256xf32>
    %c0_12 = arith.constant 0 : index
    %c0_13 = arith.constant 0 : index
    %c0_14 = arith.constant 0 : index
    %31 = vector.load %arg5[%c0_12, %c0_13, %c0_14] : memref<1x4x256xf32, #tpu.memory_space<vmem>>, vector<1x4x256xf32>
    %32 = vector.shape_cast %31 : vector<1x4x256xf32> to vector<4x256xf32>
    %33 = vector.shape_cast %30 : vector<4x256xf32> to vector<1x4x256xf32>
    tpu.vector_store %arg5[%c0_12, %c0_13, %c0_14], %33 {strides = array<i32>} : memref<1x4x256xf32, #tpu.memory_space<vmem>>, vector<1x4x256xf32>,
    return
  }
  func.func @transform_0(%arg0: i32, %arg1: i32) -> (i32, i32, i32) {
    %c0_i32 = arith.constant 0 : i32
    %c0_i32_0 = arith.constant 0 : i32
    return %arg0, %c0_i32, %arg1 : i32, i32, i32
  }
  func.func @transform_1(%arg0: i32, %arg1: i32) -> (i32, i32, i32) {
    %c0_i32 = arith.constant 0 : i32
    %c0_i32_0 = arith.constant 0 : i32
    %c0_i32_1 = arith.constant 0 : i32
    %c0_i32_2 = arith.constant 0 : i32
    return %c0_i32, %c0_i32_0, %c0_i32_1 : i32, i32, i32
  }
  func.func @transform_2(%arg0: i32, %arg1: i32) -> (i32, i32) {
    %c0_i32 = arith.constant 0 : i32
    %c0_i32_0 = arith.constant 0 : i32
    %c0_i32_1 = arith.constant 0 : i32
    return %c0_i32, %c0_i32_0 : i32, i32
  }
  func.func @transform_3(%arg0: i32, %arg1: i32) -> (i32, i32, i32) {
    %c0_i32 = arith.constant 0 : i32
    %c0_i32_0 = arith.constant 0 : i32
    return %arg0, %c0_i32, %arg1 : i32, i32, i32
  }
}

</mosaic_0001>

<bundles_post_ra>
// kernel: tpu_custom_call.1
= control target key start
LH: loop header
LB: loop body
LE: loop exit
PB: predicated region body
PF: predicated region fallthrough
CT: control target
= control target key end

     0   :  { %8 = vsyncpa [#allocation3], 0  ;;  %s655_s0 = inlined_call_operand.vmem [shape: f32[2,3,256], index: 0, kind: input, shape index: {}]   ;;  %s656_s1 = inlined_call_operand.vmem [shape: f32[3,4,1], index: 1, kind: input, shape index: {}]   ;;  %s657_s2 = inlined_call_operand.vmem [shape: f32[4,1], index: 2, kind: input, shape index: {}]   ;;  %s658_s3 = inlined_call_operand.hbm [shape: f32[2,4,256], index: 3, kind: output, shape index: {}]  }
   0x1   :  { %10 = vsyncpa [#allocation3 + $0x1], 0  ;;  %s542_s12 = smov 0   ;;  %s544_s13 = smov 0  }
   0x2   :  { %s546_s14 = smov 0   ;;  %s548_s15 = smov 0  }
   0x3   :  { %s550_s16 = smov 0   ;;  %s552_s17 = smov 0  }
   0x4 LB: > { %s366_s18 = sadd.s32 4294967295, %s519_s17   ;;  %s367_s19 = sadd.s32 4294967294, %s519_s17   ;;  %s519_s17 = sphi %s552_s17, %s16_s17   ;;  %s515_s16 = sphi %s550_s16, %s665_s16   ;;  %s511_s15 = sphi %s548_s15, %s664_s15   ;;  %s507_s14 = sphi %s546_s14, %s663_s14   ;;  %s503_s13 = sphi %s544_s13, %s662_s13   ;;  %s499_s12 = sphi %s542_s12, %s661_s12  }
   0x5   : > { %s28_s20 = sadd.s32 1, %s515_s16  ;;  %s107_s21 = sadd.s32 1, %s507_s14 }
   0x6   : > { %p30_p0 = scmp.ge.s32.totalorder %s28_s20, 2  ;;  %p117_p1 = scmp.ne.s32.totalorder %s507_s14, %s503_s13 }
   0x7   : > { %p118_p2 = scmp.eq.s32.totalorder %s366_s18, 1  ;;  %p123_p3 = scmp.ne.s32.totalorder %s503_s13, %s499_s12 }
   0x8   : > { %s667_s20 = smov (%p30_p0, %s28_s20), 0  ;;  %p124_p5 = scmp.eq.s32.totalorder %s367_s19, 1 }
   0x9   : > { %p582_p4 = por %p118_p2, %p117_p1  ;;  %s102_s23 = ssub.s32 %s515_s16, %s667_s20 }
   0xa   : > { %p370_p6 = scmp.ge.s32.totalorder %s519_s17, 1  ;;  %p105_p7 = scmp.eq.s32.totalorder %s102_s23, 0 }
   0xb   : > { %p589_p8 = por %p124_p5, %p123_p3  ;;  %p161_p9 = scmp.lt.s32.totalorder %s519_s17, 3 }
   0xc   : > { %s595_s25 = scalar_select %p105_p7, %s507_s14, %s107_s21  }
   0xd   : > { %p162_p10 = pnand %p370_p6, %p161_p9 }
   0xe   : > { %p190_p11 = scmp.lt.s32.totalorder (!%p162_p10), %s511_s15, 1  ;;  %s186_s18 = sand.u32 (!%p162_p10), 1, %s503_s13  }
   0xf   : > { %165 = sbr.rel (%p162_p10) target bundleno = 160 (0xa0), region = 32  ;;  %s371_s19 = sshll.u32 (!%p162_p10), %s186_s18, 3 }
  0x10   : > { %s382_s21 = sshll.u32 (!%p162_p10), %s511_s15, 3  ;;  %s188_s28 = scalar_lea.vmem (!%p162_p10), [#allocation2], %s371_s19 }
  0x11   : > { %s285_s27 = scalar_lea.hbm (!%p162_p10), %s658_s3, %s382_s21  ;;  %s287_s29 = sshll.u32 (!%p162_p10), %s188_s28, 4  ;;  %s288_s29 = int_to_ptr.vmem [resolvable:$true] %s287_s29 }
  0x12   : > { %s289_s30 = sshll.u32 (!%p162_p10), %s285_s27, 4  ;;  %s290_s30 = int_to_ptr.hbm [resolvable:$true] %s289_s30 }
  0x13   : > { %s455_s4 = sshra.s32 (!%p162_p10), %s290_s30, 4  ;;  %s456_s4 = int_to_ptr.hbm [resolvable:$true] %s455_s4 }
  0x14   : > { %v374_v0 = vld [vmem:[%s656_s1 + $0x4] sm:$0xf]  ;;  %v207_v1 = vld [vmem:[%s656_s1] sm:$0xf]  ;;  %v521_v2 = vmov 0   ;;  %s191_s7 = scalar_select %p190_p11, %s511_s15, 1 }
  0x15   : > { %440 = vset.pattern.permute.xlu1 %v521_v2  ;;  %439 = vset.pattern.permute.xlu0 %v521_v2  ;;  %v375_v3 = vld [vmem:[%s656_s1 + $0x8] sm:$0xf]  ;;  %v201_v4 = vld [vmem:[%s657_s2] sm:$0xf]  ;;  %vm267_vm2 = vcmask 1043456   ;;  %s272_s15 = scalar_lea.sflag [#allocation3], %s186_s18  ;;  %p462_p1 = scmp.lt.s32.totalorder %s456_s4, %s658_s3 }
  0x16   : > { %228 = vperm.xlu1 %440, %v374_v0   ;;  %210 = vperm.xlu0 %439, %v207_v1   ;;  %s381_s8 = sshll.u32 %s191_s7, 3  ;;  %s457_s5 = scalar_lea.hbm %s456_s4, 8 }
  0x17   : > { %s197_s11 = scalar_lea.vmem %s655_s0, %s381_s8  ;;  %p458_p12 = scmp.ne.s32.totalorder %s456_s4, %s457_s5 }
  0x18   : > { %v200_v5 = vld [vmem:[%s197_s11] sm:$0x77]  ;;  %s461_s8 = scalar_lea.hbm %s658_s3, 16 }
  0x19   : > { %v214_v6 = vperm.slane %v200_v5, 0  ;;  %v215_v7 = vperm.slane %v200_v5, 4  ;;  %v231_v10 = vperm.slane %v200_v5, 1  ;;  %v232_v11 = vperm.slane %v200_v5, 5  ;;  %p459_p13 = pnand %p458_p12, %p582_p4  ;;  %p463_p2 = scmp.lt.s32.totalorder %s461_s8, %s457_s5 }
  0x1a   : > { %v248_v14 = vperm.slane %v200_v5, 2  ;;  %v249_v15 = vperm.slane %v200_v5, 6 }
  0x1b   : > { %v218_v12 = vperm.slane %v214_v6, 0  ;;  %v219_v13 = vperm.slane %v215_v7, 0  ;;  %v235_v16 = vperm.slane %v231_v10, 1  ;;  %v236_v17 = vperm.slane %v232_v11, 1  ;;  %p460_p0 = pneg %p459_p13  ;;  %p464_p3 = por %p463_p2, %p462_p1 }
  0x1c   : > { %v252_v20 = vperm.slane %v248_v14, 2  ;;  %v253_v21 = vperm.slane %v249_v15, 2 }
  0x1d   : > { %p465_p5 = pnand %p464_p3, %p460_p0 }
  0x1e   : > { %245 = vperm.xlu1 %440, %v375_v3   ;;  %204 = vperm.xlu0 %439, %v201_v4  }
  0x88   : > { %v229_v8 = vpop.permute.xlu1 %228  ;;  %v211_v9 = vpop.permute.xlu0 %210 }
  0x89   : > { %v220_v18 = vmul.f32 %v218_v12, %v211_v9  ;;  %v221_v19 = vmul.f32 %v219_v13, %v211_v9  ;;  %v237_v24 = vmul.f32 %v235_v16, %v229_v8  ;;  %v238_v25 = vmul.f32 %v236_v17, %v229_v8 }
  0x90   : > { %v246_v22 = vpop.permute.xlu1 %245  ;;  %v205_v23 = vpop.permute.xlu0 %204 }
  0x91   : > { %v222_v26 = vadd.f32 %v220_v18, %v205_v23  ;;  %v223_v27 = vadd.f32 %v221_v19, %v205_v23  ;;  %v254_v28 = vmul.f32 %v252_v20, %v246_v22  ;;  %v255_v29 = vmul.f32 %v253_v21, %v246_v22 }
  0x93   : > { %v239_v30 = vadd.f32 %v237_v24, %v222_v26  ;;  %v240_v31 = vadd.f32 %v238_v25, %v223_v27 }
  0x95   : > { %v256_v32 = vadd.f32 %v254_v28, %v239_v30  ;;  %v257_v33 = vadd.f32 %v255_v29, %v240_v31 }
  0x97   : > { %vm259_vm0 = vcmp.gt.f32.partialorder %v257_v33, 0.0  ;;  %v260_v34 = vmul.f32 0.2, %v256_v32  ;;  %v261_v35 = vmul.f32 0.2, %v257_v33  ;;  %vm258_vm1 = vcmp.gt.f32.partialorder %v256_v32, 0.0 }
  0x99   : > { %v263_v36 = vsel %vm259_vm0, %v257_v33, %v261_v35  ;;  %v262_v38 = vsel %vm258_vm1, %v256_v32, %v260_v34 }
  0x9a   : > { %v266_v37 = vrot.slane %v263_v36, 4 }
  0x9c   : > { %v268_v39 = vsel %vm267_vm2, %v262_v38, %v266_v37 }
  0x9d   : > { %270 = vst [vmem:[%s188_s28] sm:$0xff] %v268_v39 }
  0x9e   : > { %468 = shalt.err (!%p465_p5)
}
  0x9f   : > { %383 = dma.vmem_to_hbm [thread:$0]  (%p582_p4), %s288_s29, 128, %s290_s30, %s272_s15  }
  0xa0 PF: > { %p389_p6 = scmp.ge.s32.totalorder %s519_s17, 2  ;;  %s301_s11 = sand.u32 1, %s499_s12  }
  0xa1   : > { %s302_s18 = scalar_lea.sflag [#allocation3], %s301_s11 }
  0xa2   : > { %p386_p7 = pnand %p389_p6, %p589_p8 }
  0xa4   : > { %p387_p9 = pneg %p386_p7 }
  0xa6   : > { %494 = dma.done.wait (%p387_p9), %s302_s18, 128  }
  0xa7   : > { %496 = vsyncadd (%p387_p9), %s302_s18, 4294967168  ;;  %s16_s17 = sadd.s32 1, %s519_s17   ;;  %s661_s12 = smov %s503_s13 }
  0xa8   : > { %p13_p10 = scmp.ge.s32.totalorder %s16_s17, 4   ;;  %s662_s13 = smov %s507_s14 }
  0xa9   : > { %s663_s14 = smov %s595_s25  ;;  %s664_s15 = smov %s515_s16 }
  0xaa   : > { %s665_s16 = smov %s667_s20  ;;  %15 = sbr.rel (!%p13_p10) target bundleno = 4 (0x4), region = 69 }
  0xaf   :  { %308 = vsyncpa [#allocation3], 1 }
  0xb0   :  { %310 = vsyncpa [#allocation3 + $0x1], 1 }

</bundles_post_ra>
